<compile_context>
chip_gen: v6e
topology: v6e:2x2x1
jax: 0.10.0
libtpu: 0.0.40
codegen_flags: <defaults>
</compile_context>

<pallas_src>
import jax
import jax.numpy as jnp
from jax.experimental import pallas as pl
from jax.experimental.pallas import tpu as pltpu

EPS = 1e-5


def _round_up(v, m):
    return ((v + m - 1) // m) * m


def _vmem_footprint_bytes(shape, itemsize=4):
    """VMEM footprint of a 2-D f32/i32 buffer after (8,128) tile padding."""
    r, c = shape
    return _round_up(max(int(r), 1), 8) * _round_up(max(int(c), 1), 128) * itemsize


def _make_kernel(num_graphs, num_graphs_pad, leakiness):
    G = int(num_graphs)
    Gp = int(num_graphs_pad)
    slope = float(leakiness)
    inv_g = 1.0 / float(G)

    def kernel(batch_ref, x_ref,
               bn1g_ref, bn1b_ref, w1_ref, b1_ref,
               bn2g_ref, bn2b_ref, w2_ref, b2_ref,
               bn3g_ref, bn3b_ref, w3_ref, b3_ref,
               o_ref,
               sums_ref, counts_ref):
        pid = pl.program_id(0)

        @pl.when(pid == 0)
        def _():
            sums_ref[...] = jnp.zeros_like(sums_ref)
            counts_ref[...] = jnp.zeros_like(counts_ref)

        # ---- streamed scatter-mean accumulation for this node tile ----
        xb = x_ref[...]                                      # (TN, Fin) f32
        bb = batch_ref[...]                                  # (1, TN) int32
        tn = bb.shape[1]
        gid = jax.lax.broadcasted_iota(jnp.int32, (Gp, tn), 0)
        mask = (bb == gid).astype(jnp.float32)               # (Gp, TN); pad nodes match nothing
        # Per-graph feature sums via MXU, f32 accumulation (mask entries are exact 0/1).
        sums_ref[...] += jnp.dot(mask, xb, preferred_element_type=jnp.float32)
        # Per-graph node counts: cross-vreg adds + one lane reduce of the same mask.
        counts_ref[...] += jnp.sum(mask, axis=1, keepdims=True)

        # ---- finalize: mean pooling + BN/Linear/LeakyReLU MLP (runs once) ----
        @pl.when(pid == pl.num_programs(0) - 1)
        def _():
            counts = jnp.maximum(counts_ref[...], 1.0)       # (Gp, 1)
            pooled = sums_ref[...] / counts                  # exact division (review fix)

            row = jax.lax.broadcasted_iota(jnp.int32, (Gp, 1), 0)
            valid = (row < G).astype(jnp.float32)   # exclude padded graph rows from BN stats

            def batchnorm(h, gamma, beta):
                # Two-pass mean/variance (review fix), biased variance over the G real rows.
                hm = h * valid
                mean = jnp.sum(hm, axis=0, keepdims=True) * inv_g
                diff = (h - mean) * valid
                var = jnp.sum(diff * diff, axis=0, keepdims=True) * inv_g
                return (h - mean) * jax.lax.rsqrt(var + EPS) * gamma + beta

            def leaky_relu(h):
                return jnp.where(h >= 0.0, h, slope * h)

            h = batchnorm(pooled, bn1g_ref[...], bn1b_ref[...])
            h = jnp.dot(h, w1_ref[...], preferred_element_type=jnp.float32) + b1_ref[...]
            h = leaky_relu(h)
            h = batchnorm(h, bn2g_ref[...], bn2b_ref[...])
            h = jnp.dot(h, w2_ref[...], preferred_element_type=jnp.float32) + b2_ref[...]
            h = leaky_relu(h)
            h = batchnorm(h, bn3g_ref[...], bn3b_ref[...])
            h = jnp.dot(h, w3_ref[...], preferred_element_type=jnp.float32) + b3_ref[...]

            o_ref[...] = h.astype(o_ref.dtype)

    return kernel


def global_model_forward(x, batch, params, num_graphs, leakiness=0.0, node_tile=8192):
    """x: (N, node_in) f32, batch: (N,) int graph ids in [0, num_graphs)."""
    N, node_in = x.shape
    node_out = params["w1"].shape[1]

    # Big node tiles amortize per-grid-step overhead; clamp so tiny inputs aren't over-padded.
    node_tile = min(int(node_tile), max(128, _round_up(N, 128)))
    assert node_tile % 128 == 0, "node_tile must be a multiple of 128"

    # Padded sizes: graphs -> sublane multiple, MLP width -> lane multiple, nodes -> tile.
    Gp = max(_round_up(num_graphs, 8), 8)
    Pout = max(_round_up(node_out, 128), 128)
    Np = _round_up(max(N, 1), node_tile)
    n_tiles = Np // node_tile

    # Stream x in f32 directly (no bf16 repack). Pad only if needed; padded node rows are
    # zero and get an out-of-range graph id so they never contribute to any graph.
    x_in = x.astype(jnp.float32)
    batch_i32 = batch.astype(jnp.int32)
    if Np != N:
        x_in = jnp.pad(x_in, ((0, Np - N), (0, 0)))
        batch_i32 = jnp.pad(batch_i32, (0, Np - N), constant_values=Gp)
    batch_2d = batch_i32.reshape(1, Np)

    def pad2(a, rows, cols):
        return jnp.pad(a, ((0, rows - a.shape[0]), (0, cols - a.shape[1])))

    # Padded weight rows/cols and biases/BN-params are zero -> padded lanes stay 0
    # through the whole MLP and are sliced off at the end.
    p = {
        "bn1_g": params["bn1_g"], "bn1_b": params["bn1_b"],
        "w1": pad2(params["w1"], node_in, Pout), "b1": pad2(params["b1"], 1, Pout),
        "bn2_g": pad2(params["bn2_g"], 1, Pout), "bn2_b": pad2(params["bn2_b"], 1, Pout),
        "w2": pad2(params["w2"], Pout, Pout), "b2": pad2(params["b2"], 1, Pout),
        "bn3_g": pad2(params["bn3_g"], 1, Pout), "bn3_b": pad2(params["bn3_b"], 1, Pout),
        "w3": pad2(params["w3"], Pout, Pout), "b3": pad2(params["b3"], 1, Pout),
    }
    param_list = [p["bn1_g"], p["bn1_b"], p["w1"], p["b1"],
                  p["bn2_g"], p["bn2_b"], p["w2"], p["b2"],
                  p["bn3_g"], p["bn3_b"], p["w3"], p["b3"]]

    def resident_spec(a):
        # Constant index_map -> fetched once, stays resident across node tiles.
        return pl.BlockSpec(a.shape, lambda i: (0, 0))

    in_specs = (
        [pl.BlockSpec((1, node_tile), lambda i: (0, i)),           # batch ids (streamed)
         pl.BlockSpec((node_tile, node_in), lambda i: (i, 0))]     # x (streamed, f32)
        + [resident_spec(a) for a in param_list]
    )

    # Explicit VMEM budget derived from actual (lane-padded) buffer sizes so large tiles
    # compile on all generations (v7x has only 64 MiB physical VMEM per TensorCore).
    x_buf = 2 * _vmem_footprint_bytes((node_tile, node_in))
    b_buf = 2 * _vmem_footprint_bytes((1, node_tile))
    p_buf = 2 * sum(_vmem_footprint_bytes(a.shape) for a in param_list)
    o_buf = 2 * _vmem_footprint_bytes((Gp, Pout))
    s_buf = _vmem_footprint_bytes((Gp, node_in)) + _vmem_footprint_bytes((Gp, 1))
    vmem_limit = min(max(x_buf + b_buf + p_buf + o_buf + s_buf + (4 << 20), 16 << 20), 48 << 20)

    out = pl.pallas_call(
        _make_kernel(num_graphs, Gp, leakiness),
        out_shape=jax.ShapeDtypeStruct((Gp, Pout), jnp.float32),
        grid=(n_tiles,),
        in_specs=in_specs,
        out_specs=pl.BlockSpec((Gp, Pout), lambda i: (0, 0)),
        scratch_shapes=[pltpu.VMEM((Gp, node_in), jnp.float32),    # per-graph feature sums
                        pltpu.VMEM((Gp, 1), jnp.float32)],         # per-graph node counts
        compiler_params=pltpu.CompilerParams(
            dimension_semantics=("arbitrary",),        # node axis reduces into scratch
            vmem_limit_bytes=vmem_limit),
    )(batch_2d, x_in, *param_list)

    return out[:num_graphs, :node_out]


def init_params(key, node_in, node_out):
    ks = jax.random.split(key, 3)
    p = {}
    # BatchNorm1d affine params (gamma=1, beta=0 like PyTorch init).
    p["bn1_g"] = jnp.ones((1, node_in), jnp.float32)
    p["bn1_b"] = jnp.zeros((1, node_in), jnp.float32)
    p["bn2_g"] = jnp.ones((1, node_out), jnp.float32)
    p["bn2_b"] = jnp.zeros((1, node_out), jnp.float32)
    p["bn3_g"] = jnp.ones((1, node_out), jnp.float32)
    p["bn3_b"] = jnp.zeros((1, node_out), jnp.float32)

    # Linear weights, stored pre-transposed as (in, out); PyTorch-style uniform init.
    def lin(k, fin, fout):
        bound = 1.0 / (fin ** 0.5)
        kw, kb = jax.random.split(k)
        w = jax.random.uniform(kw, (fin, fout), jnp.float32, -bound, bound)
        b = jax.random.uniform(kb, (1, fout), jnp.float32, -bound, bound)
        return w, b

    p["w1"], p["b1"] = lin(ks[0], node_in, node_out)
    p["w2"], p["b2"] = lin(ks[1], node_out, node_out)
    p["w3"], p["b3"] = lin(ks[2], node_out, node_out)
    return p


def reference_forward(x, batch, params, num_graphs, leakiness=0.0):
    """Pure-JAX f32 reference matching the PyTorch module (train-mode BN)."""
    mask = (batch[None, :] == jnp.arange(num_graphs)[:, None]).astype(jnp.float32)
    counts = mask.sum(axis=1, keepdims=True)
    pooled = (mask @ x) / jnp.maximum(counts, 1.0)

    def bn(h, g, b):
        m = h.mean(axis=0, keepdims=True)
        v = ((h - m) ** 2).mean(axis=0, keepdims=True)
        return (h - m) / jnp.sqrt(v + EPS) * g + b

    def lrelu(h):
        return jnp.where(h >= 0.0, h, leakiness * h)

    h = bn(pooled, params["bn1_g"], params["bn1_b"])
    h = lrelu(h @ params["w1"] + params["b1"])
    h = bn(h, params["bn2_g"], params["bn2_b"])
    h = lrelu(h @ params["w2"] + params["b2"])
    h = bn(h, params["bn3_g"], params["bn3_b"])
    h = h @ params["w3"] + params["b3"]
    return h


if __name__ == "__main__":
    key = jax.random.PRNGKey(0)
    k_x, k_b, k_p = jax.random.split(key, 3)

    N = 384           # number of nodes (small, but exercises multiple node tiles)
    node_in = 8       # input node-feature dim
    node_out = 32     # MLP hidden / output dim
    num_graphs = 4    # number of graphs in the batch
    leakiness = 0.1

    x = jax.random.normal(k_x, (N, node_in), jnp.float32)
    batch = jax.random.randint(k_b, (N,), 0, num_graphs, jnp.int32)
    params = init_params(k_p, node_in, node_out)

    # Small node_tile here so the multi-tile accumulation path is exercised;
    # production calls should use the (large) default node_tile.
    out = global_model_forward(x, batch, params, num_graphs, leakiness, node_tile=128)
    out = jax.block_until_ready(out)

    ref = reference_forward(x, batch, params, num_graphs, leakiness)
    assert out.shape == (num_graphs, node_out)
    # f32 end-to-end + exact division + two-pass variance -> tight tolerance.
    assert jnp.allclose(out, ref, atol=1e-3, rtol=1e-3), "mismatch vs reference"

    print("KERNEL_OK")
</pallas_src>

<mosaic_0001>
module attributes {stable_mosaic.version = 11 : i64} {
  func.func @kernel(%arg0: i32, %arg1: memref<1x128xi32, #tpu.memory_space<vmem>>, %arg2: memref<128x8xf32, #tpu.memory_space<vmem>>, %arg3: memref<1x8xf32, #tpu.memory_space<vmem>>, %arg4: memref<1x8xf32, #tpu.memory_space<vmem>>, %arg5: memref<8x128xf32, #tpu.memory_space<vmem>>, %arg6: memref<1x128xf32, #tpu.memory_space<vmem>>, %arg7: memref<1x128xf32, #tpu.memory_space<vmem>>, %arg8: memref<1x128xf32, #tpu.memory_space<vmem>>, %arg9: memref<128x128xf32, #tpu.memory_space<vmem>>, %arg10: memref<1x128xf32, #tpu.memory_space<vmem>>, %arg11: memref<1x128xf32, #tpu.memory_space<vmem>>, %arg12: memref<1x128xf32, #tpu.memory_space<vmem>>, %arg13: memref<128x128xf32, #tpu.memory_space<vmem>>, %arg14: memref<1x128xf32, #tpu.memory_space<vmem>>, %arg15: memref<8x128xf32, #tpu.memory_space<vmem>>, %arg16: memref<8x8xf32, #tpu.memory_space<vmem>>, %arg17: memref<8x1xf32, #tpu.memory_space<vmem>>) attributes {dimension_semantics = [#tpu.dimension_semantics<arbitrary>], iteration_bounds = array<i64: 3>, scalar_prefetch = 0 : i64, scratch_operands = 2 : i64, tpu.core_type = #tpu.core_type<tc>, window_params = [{transform_indices = @transform_0, window_bounds = array<i64: 1, 128>}, {transform_indices = @transform_1, window_bounds = array<i64: 128, 8>}, {pipeline_mode = #tpu.pipeline_mode<synchronous>, transform_indices = @transform_2, window_bounds = array<i64: 1, 8>}, {pipeline_mode = #tpu.pipeline_mode<synchronous>, transform_indices = @transform_3, window_bounds = array<i64: 1, 8>}, {pipeline_mode = #tpu.pipeline_mode<synchronous>, transform_indices = @transform_4, window_bounds = array<i64: 8, 128>}, {pipeline_mode = #tpu.pipeline_mode<synchronous>, transform_indices = @transform_5, window_bounds = array<i64: 1, 128>}, {pipeline_mode = #tpu.pipeline_mode<synchronous>, transform_indices = @transform_6, window_bounds = array<i64: 1, 128>}, {pipeline_mode = #tpu.pipeline_mode<synchronous>, transform_indices = @transform_7, window_bounds = array<i64: 1, 128>}, {pipeline_mode = #tpu.pipeline_mode<synchronous>, transform_indices = @transform_8, window_bounds = array<i64: 128, 128>}, {pipeline_mode = #tpu.pipeline_mode<synchronous>, transform_indices = @transform_9, window_bounds = array<i64: 1, 128>}, {pipeline_mode = #tpu.pipeline_mode<synchronous>, transform_indices = @transform_10, window_bounds = array<i64: 1, 128>}, {pipeline_mode = #tpu.pipeline_mode<synchronous>, transform_indices = @transform_11, window_bounds = array<i64: 1, 128>}, {pipeline_mode = #tpu.pipeline_mode<synchronous>, transform_indices = @transform_12, window_bounds = array<i64: 128, 128>}, {pipeline_mode = #tpu.pipeline_mode<synchronous>, transform_indices = @transform_13, window_bounds = array<i64: 1, 128>}, {pipeline_mode = #tpu.pipeline_mode<synchronous>, transform_indices = @transform_14, window_bounds = array<i64: 8, 128>}]} {
    %c0_i32 = arith.constant 0 : i32
    %0 = arith.cmpi eq, %arg0, %c0_i32 : i32
    %1 = arith.extui %0 : i1 to i32
    %c0_i32_0 = arith.constant 0 : i32
    %2 = arith.cmpi ne, %1, %c0_i32_0 : i32
    scf.if %2 {
      %cst_14 = arith.constant 0.000000e+00 : f32
      %22 = vector.broadcast %cst_14 : f32 to vector<8x8xf32>
      %c0_15 = arith.constant 0 : index
      %c0_16 = arith.constant 0 : index
      %23 = vector.load %arg16[%c0_15, %c0_16] : memref<8x8xf32, #tpu.memory_space<vmem>>, vector<8x8xf32>
      tpu.vector_store %arg16[%c0_15, %c0_16], %22 {strides = array<i32>} : memref<8x8xf32, #tpu.memory_space<vmem>>, vector<8x8xf32>,
      %cst_17 = arith.constant 0.000000e+00 : f32
      %24 = vector.broadcast %cst_17 : f32 to vector<8x1xf32>
      %c0_18 = arith.constant 0 : index
      %c0_19 = arith.constant 0 : index
      %25 = vector.load %arg17[%c0_18, %c0_19] : memref<8x1xf32, #tpu.memory_space<vmem>>, vector<8x1xf32>
      tpu.vector_store %arg17[%c0_18, %c0_19], %24 {strides = array<i32>} : memref<8x1xf32, #tpu.memory_space<vmem>>, vector<8x1xf32>,
    } else {
    }
    %c0 = arith.constant 0 : index
    %c0_1 = arith.constant 0 : index
    %3 = vector.load %arg2[%c0, %c0_1] : memref<128x8xf32, #tpu.memory_space<vmem>>, vector<128x8xf32>
    %c0_2 = arith.constant 0 : index
    %c0_3 = arith.constant 0 : index
    %4 = vector.load %arg1[%c0_2, %c0_3] : memref<1x128xi32, #tpu.memory_space<vmem>>, vector<1x128xi32>
    %5 = tpu.iota {dimensions = array<i32: 0>} : vector<8x128xi32>
    %6 = vector.broadcast %4 : vector<1x128xi32> to vector<8x128xi32>
    %7 = arith.cmpi eq, %6, %5 : vector<8x128xi32>
    %8 = arith.extui %7 : vector<8x128xi1> to vector<8x128xi32>
    %9 = arith.sitofp %8 : vector<8x128xi32> to vector<8x128xf32>
    %c0_4 = arith.constant 0 : index
    %c0_5 = arith.constant 0 : index
    %10 = vector.load %arg16[%c0_4, %c0_5] : memref<8x8xf32, #tpu.memory_space<vmem>>, vector<8x8xf32>
    %cst = arith.constant dense<0.000000e+00> : vector<8x8xf32>
    %11 = tpu.matmul %9, %3, %cst {dimension_numbers = #tpu.dot_dimension_numbers<[1], [0], [0], [1], [0, 0, 1, 1], [], []>} : vector<8x128xf32>, vector<128x8xf32>, vector<8x8xf32> -> vector<8x8xf32>
    %12 = arith.addf %10, %11 : vector<8x8xf32>
    %c0_6 = arith.constant 0 : index
    %c0_7 = arith.constant 0 : index
    %13 = vector.load %arg16[%c0_6, %c0_7] : memref<8x8xf32, #tpu.memory_space<vmem>>, vector<8x8xf32>
    tpu.vector_store %arg16[%c0_6, %c0_7], %12 {strides = array<i32>} : memref<8x8xf32, #tpu.memory_space<vmem>>, vector<8x8xf32>,
    %c0_8 = arith.constant 0 : index
    %c0_9 = arith.constant 0 : index
    %14 = vector.load %arg17[%c0_8, %c0_9] : memref<8x1xf32, #tpu.memory_space<vmem>>, vector<8x1xf32>
    %cst_10 = arith.constant dense<0.000000e+00> : vector<8xf32>
    %15 = vector.multi_reduction <add>, %9, %cst_10 [1] : vector<8x128xf32> to vector<8xf32>
    %16 = vector.shape_cast %15 : vector<8xf32> to vector<8x1xf32>
    %17 = arith.addf %14, %16 : vector<8x1xf32>
    %c0_11 = arith.constant 0 : index
    %c0_12 = arith.constant 0 : index
    %18 = vector.load %arg17[%c0_11, %c0_12] : memref<8x1xf32, #tpu.memory_space<vmem>>, vector<8x1xf32>
    tpu.vector_store %arg17[%c0_11, %c0_12], %17 {strides = array<i32>} : memref<8x1xf32, #tpu.memory_space<vmem>>, vector<8x1xf32>,
    %c2_i32 = arith.constant 2 : i32
    %19 = arith.cmpi eq, %arg0, %c2_i32 : i32
    %20 = arith.extui %19 : i1 to i32
    %c0_i32_13 = arith.constant 0 : i32
    %21 = arith.cmpi ne, %20, %c0_i32_13 : i32
    scf.if %21 {
      %c0_14 = arith.constant 0 : index
      %c0_15 = arith.constant 0 : index
      %22 = vector.load %arg17[%c0_14, %c0_15] : memref<8x1xf32, #tpu.memory_space<vmem>>, vector<8x1xf32>
      %cst_16 = arith.constant 1.000000e+00 : f32
      %23 = vector.broadcast %cst_16 : f32 to vector<8x1xf32>
      %24 = arith.maximumf %22, %23 : vector<8x1xf32>
      %c0_17 = arith.constant 0 : index
      %c0_18 = arith.constant 0 : index
      %25 = vector.load %arg16[%c0_17, %c0_18] : memref<8x8xf32, #tpu.memory_space<vmem>>, vector<8x8xf32>
      %26 = vector.broadcast %24 : vector<8x1xf32> to vector<8x8xf32>
      %27 = arith.divf %25, %26 : vector<8x8xf32>
      %28 = tpu.iota {dimensions = array<i32: 0>} : vector<8x1xi32>
      %c4_i32 = arith.constant 4 : i32
      %29 = vector.broadcast %c4_i32 : i32 to vector<8x1xi32>
      %30 = arith.cmpi slt, %28, %29 : vector<8x1xi32>
      %31 = arith.extui %30 : vector<8x1xi1> to vector<8x1xi32>
      %32 = arith.sitofp %31 : vector<8x1xi32> to vector<8x1xf32>
      %c0_19 = arith.constant 0 : index
      %c0_20 = arith.constant 0 : index
      %33 = vector.load %arg3[%c0_19, %c0_20] : memref<1x8xf32, #tpu.memory_space<vmem>>, vector<1x8xf32>
      %c0_21 = arith.constant 0 : index
      %c0_22 = arith.constant 0 : index
      %34 = vector.load %arg4[%c0_21, %c0_22] : memref<1x8xf32, #tpu.memory_space<vmem>>, vector<1x8xf32>
      %35 = vector.broadcast %32 : vector<8x1xf32> to vector<8x8xf32>
      %36 = arith.mulf %27, %35 : vector<8x8xf32>
      %cst_23 = arith.constant dense<0.000000e+00> : vector<8xf32>
      %37 = vector.multi_reduction <add>, %36, %cst_23 [0] : vector<8x8xf32> to vector<8xf32>
      %38 = vector.shape_cast %37 : vector<8xf32> to vector<1x8xf32>
      %cst_24 = arith.constant 2.500000e-01 : f32
      %39 = vector.broadcast %cst_24 : f32 to vector<1x8xf32>
      %40 = arith.mulf %38, %39 : vector<1x8xf32>
      %41 = vector.broadcast %40 : vector<1x8xf32> to vector<8x8xf32>
      %42 = arith.subf %27, %41 : vector<8x8xf32>
      %43 = vector.broadcast %32 : vector<8x1xf32> to vector<8x8xf32>
      %44 = arith.mulf %42, %43 : vector<8x8xf32>
      %45 = arith.mulf %44, %44 : vector<8x8xf32>
      %cst_25 = arith.constant dense<0.000000e+00> : vector<8xf32>
      %46 = vector.multi_reduction <add>, %45, %cst_25 [0] : vector<8x8xf32> to vector<8xf32>
      %47 = vector.shape_cast %46 : vector<8xf32> to vector<1x8xf32>
      %cst_26 = arith.constant 2.500000e-01 : f32
      %48 = vector.broadcast %cst_26 : f32 to vector<1x8xf32>
      %49 = arith.mulf %47, %48 : vector<1x8xf32>
      %50 = vector.broadcast %40 : vector<1x8xf32> to vector<8x8xf32>
      %51 = arith.subf %27, %50 : vector<8x8xf32>
      %cst_27 = arith.constant 9.99999974E-6 : f32
      %52 = vector.broadcast %cst_27 : f32 to vector<1x8xf32>
      %53 = arith.addf %49, %52 : vector<1x8xf32>
      %54 = math.rsqrt %53 : vector<1x8xf32>
      %55 = vector.broadcast %54 : vector<1x8xf32> to vector<8x8xf32>
      %56 = arith.mulf %51, %55 : vector<8x8xf32>
      %57 = vector.broadcast %33 : vector<1x8xf32> to vector<8x8xf32>
      %58 = arith.mulf %56, %57 : vector<8x8xf32>
      %59 = vector.broadcast %34 : vector<1x8xf32> to vector<8x8xf32>
      %60 = arith.addf %58, %59 : vector<8x8xf32>
      %c0_28 = arith.constant 0 : index
      %c0_29 = arith.constant 0 : index
      %61 = vector.load %arg5[%c0_28, %c0_29] : memref<8x128xf32, #tpu.memory_space<vmem>>, vector<8x128xf32>
      %cst_30 = arith.constant dense<0.000000e+00> : vector<8x128xf32>
      %62 = tpu.matmul %60, %61, %cst_30 {dimension_numbers = #tpu.dot_dimension_numbers<[1], [0], [0], [1], [0, 0, 1, 1], [], []>} : vector<8x8xf32>, vector<8x128xf32>, vector<8x128xf32> -> vector<8x128xf32>
      %c0_31 = arith.constant 0 : index
      %c0_32 = arith.constant 0 : index
      %63 = vector.load %arg6[%c0_31, %c0_32] : memref<1x128xf32, #tpu.memory_space<vmem>>, vector<1x128xf32>
      %64 = vector.broadcast %63 : vector<1x128xf32> to vector<8x128xf32>
      %65 = arith.addf %62, %64 : vector<8x128xf32>
      %cst_33 = arith.constant 0.000000e+00 : f32
      %66 = vector.broadcast %cst_33 : f32 to vector<8x128xf32>
      %67 = arith.cmpf oge, %65, %66 : vector<8x128xf32>
      %cst_34 = arith.constant 1.000000e-01 : f32
      %68 = vector.broadcast %cst_34 : f32 to vector<8x128xf32>
      %69 = arith.mulf %68, %65 : vector<8x128xf32>
      %70 = arith.select %67, %65, %69 : vector<8x128xi1>, vector<8x128xf32>
      %c0_35 = arith.constant 0 : index
      %c0_36 = arith.constant 0 : index
      %71 = vector.load %arg7[%c0_35, %c0_36] : memref<1x128xf32, #tpu.memory_space<vmem>>, vector<1x128xf32>
      %c0_37 = arith.constant 0 : index
      %c0_38 = arith.constant 0 : index
      %72 = vector.load %arg8[%c0_37, %c0_38] : memref<1x128xf32, #tpu.memory_space<vmem>>, vector<1x128xf32>
      %73 = vector.broadcast %32 : vector<8x1xf32> to vector<8x128xf32>
      %74 = arith.mulf %70, %73 : vector<8x128xf32>
      %cst_39 = arith.constant dense<0.000000e+00> : vector<128xf32>
      %75 = vector.multi_reduction <add>, %74, %cst_39 [0] : vector<8x128xf32> to vector<128xf32>
      %76 = vector.shape_cast %75 : vector<128xf32> to vector<1x128xf32>
      %cst_40 = arith.constant 2.500000e-01 : f32
      %77 = vector.broadcast %cst_40 : f32 to vector<1x128xf32>
      %78 = arith.mulf %76, %77 : vector<1x128xf32>
      %79 = vector.broadcast %78 : vector<1x128xf32> to vector<8x128xf32>
      %80 = arith.subf %70, %79 : vector<8x128xf32>
      %81 = vector.broadcast %32 : vector<8x1xf32> to vector<8x128xf32>
      %82 = arith.mulf %80, %81 : vector<8x128xf32>
      %83 = arith.mulf %82, %82 : vector<8x128xf32>
      %cst_41 = arith.constant dense<0.000000e+00> : vector<128xf32>
      %84 = vector.multi_reduction <add>, %83, %cst_41 [0] : vector<8x128xf32> to vector<128xf32>
      %85 = vector.shape_cast %84 : vector<128xf32> to vector<1x128xf32>
      %cst_42 = arith.constant 2.500000e-01 : f32
      %86 = vector.broadcast %cst_42 : f32 to vector<1x128xf32>
      %87 = arith.mulf %85, %86 : vector<1x128xf32>
      %88 = vector.broadcast %78 : vector<1x128xf32> to vector<8x128xf32>
      %89 = arith.subf %70, %88 : vector<8x128xf32>
      %cst_43 = arith.constant 9.99999974E-6 : f32
      %90 = vector.broadcast %cst_43 : f32 to vector<1x128xf32>
      %91 = arith.addf %87, %90 : vector<1x128xf32>
      %92 = math.rsqrt %91 : vector<1x128xf32>
      %93 = vector.broadcast %92 : vector<1x128xf32> to vector<8x128xf32>
      %94 = arith.mulf %89, %93 : vector<8x128xf32>
      %95 = vector.broadcast %71 : vector<1x128xf32> to vector<8x128xf32>
      %96 = arith.mulf %94, %95 : vector<8x128xf32>
      %97 = vector.broadcast %72 : vector<1x128xf32> to vector<8x128xf32>
      %98 = arith.addf %96, %97 : vector<8x128xf32>
      %c0_44 = arith.constant 0 : index
      %c0_45 = arith.constant 0 : index
      %99 = vector.load %arg9[%c0_44, %c0_45] : memref<128x128xf32, #tpu.memory_space<vmem>>, vector<128x128xf32>
      %cst_46 = arith.constant dense<0.000000e+00> : vector<8x128xf32>
      %100 = tpu.matmul %98, %99, %cst_46 {dimension_numbers = #tpu.dot_dimension_numbers<[1], [0], [0], [1], [0, 0, 1, 1], [], []>} : vector<8x128xf32>, vector<128x128xf32>, vector<8x128xf32> -> vector<8x128xf32>
      %c0_47 = arith.constant 0 : index
      %c0_48 = arith.constant 0 : index
      %101 = vector.load %arg10[%c0_47, %c0_48] : memref<1x128xf32, #tpu.memory_space<vmem>>, vector<1x128xf32>
      %102 = vector.broadcast %101 : vector<1x128xf32> to vector<8x128xf32>
      %103 = arith.addf %100, %102 : vector<8x128xf32>
      %cst_49 = arith.constant 0.000000e+00 : f32
      %104 = vector.broadcast %cst_49 : f32 to vector<8x128xf32>
      %105 = arith.cmpf oge, %103, %104 : vector<8x128xf32>
      %cst_50 = arith.constant 1.000000e-01 : f32
      %106 = vector.broadcast %cst_50 : f32 to vector<8x128xf32>
      %107 = arith.mulf %106, %103 : vector<8x128xf32>
      %108 = arith.select %105, %103, %107 : vector<8x128xi1>, vector<8x128xf32>
      %c0_51 = arith.constant 0 : index
      %c0_52 = arith.constant 0 : index
      %109 = vector.load %arg11[%c0_51, %c0_52] : memref<1x128xf32, #tpu.memory_space<vmem>>, vector<1x128xf32>
      %c0_53 = arith.constant 0 : index
      %c0_54 = arith.constant 0 : index
      %110 = vector.load %arg12[%c0_53, %c0_54] : memref<1x128xf32, #tpu.memory_space<vmem>>, vector<1x128xf32>
      %111 = vector.broadcast %32 : vector<8x1xf32> to vector<8x128xf32>
      %112 = arith.mulf %108, %111 : vector<8x128xf32>
      %cst_55 = arith.constant dense<0.000000e+00> : vector<128xf32>
      %113 = vector.multi_reduction <add>, %112, %cst_55 [0] : vector<8x128xf32> to vector<128xf32>
      %114 = vector.shape_cast %113 : vector<128xf32> to vector<1x128xf32>
      %cst_56 = arith.constant 2.500000e-01 : f32
      %115 = vector.broadcast %cst_56 : f32 to vector<1x128xf32>
      %116 = arith.mulf %114, %115 : vector<1x128xf32>
      %117 = vector.broadcast %116 : vector<1x128xf32> to vector<8x128xf32>
      %118 = arith.subf %108, %117 : vector<8x128xf32>
      %119 = vector.broadcast %32 : vector<8x1xf32> to vector<8x128xf32>
      %120 = arith.mulf %118, %119 : vector<8x128xf32>
      %121 = arith.mulf %120, %120 : vector<8x128xf32>
      %cst_57 = arith.constant dense<0.000000e+00> : vector<128xf32>
      %122 = vector.multi_reduction <add>, %121, %cst_57 [0] : vector<8x128xf32> to vector<128xf32>
      %123 = vector.shape_cast %122 : vector<128xf32> to vector<1x128xf32>
      %cst_58 = arith.constant 2.500000e-01 : f32
      %124 = vector.broadcast %cst_58 : f32 to vector<1x128xf32>
      %125 = arith.mulf %123, %124 : vector<1x128xf32>
      %126 = vector.broadcast %116 : vector<1x128xf32> to vector<8x128xf32>
      %127 = arith.subf %108, %126 : vector<8x128xf32>
      %cst_59 = arith.constant 9.99999974E-6 : f32
      %128 = vector.broadcast %cst_59 : f32 to vector<1x128xf32>
      %129 = arith.addf %125, %128 : vector<1x128xf32>
      %130 = math.rsqrt %129 : vector<1x128xf32>
      %131 = vector.broadcast %130 : vector<1x128xf32> to vector<8x128xf32>
      %132 = arith.mulf %127, %131 : vector<8x128xf32>
      %133 = vector.broadcast %109 : vector<1x128xf32> to vector<8x128xf32>
      %134 = arith.mulf %132, %133 : vector<8x128xf32>
      %135 = vector.broadcast %110 : vector<1x128xf32> to vector<8x128xf32>
      %136 = arith.addf %134, %135 : vector<8x128xf32>
      %c0_60 = arith.constant 0 : index
      %c0_61 = arith.constant 0 : index
      %137 = vector.load %arg13[%c0_60, %c0_61] : memref<128x128xf32, #tpu.memory_space<vmem>>, vector<128x128xf32>
      %cst_62 = arith.constant dense<0.000000e+00> : vector<8x128xf32>
      %138 = tpu.matmul %136, %137, %cst_62 {dimension_numbers = #tpu.dot_dimension_numbers<[1], [0], [0], [1], [0, 0, 1, 1], [], []>} : vector<8x128xf32>, vector<128x128xf32>, vector<8x128xf32> -> vector<8x128xf32>
      %c0_63 = arith.constant 0 : index
      %c0_64 = arith.constant 0 : index
      %139 = vector.load %arg14[%c0_63, %c0_64] : memref<1x128xf32, #tpu.memory_space<vmem>>, vector<1x128xf32>
      %140 = vector.broadcast %139 : vector<1x128xf32> to vector<8x128xf32>
      %141 = arith.addf %138, %140 : vector<8x128xf32>
      %c0_65 = arith.constant 0 : index
      %c0_66 = arith.constant 0 : index
      %142 = vector.load %arg15[%c0_65, %c0_66] : memref<8x128xf32, #tpu.memory_space<vmem>>, vector<8x128xf32>
      tpu.vector_store %arg15[%c0_65, %c0_66], %141 {strides = array<i32>} : memref<8x128xf32, #tpu.memory_space<vmem>>, vector<8x128xf32>,
    } else {
    }
    return
  }
  func.func @transform_0(%arg0: i32) -> (i32, i32) {
    %c0_i32 = arith.constant 0 : i32
    %c0_i32_0 = arith.constant 0 : i32
    return %c0_i32, %arg0 : i32, i32
  }
  func.func @transform_1(%arg0: i32) -> (i32, i32) {
    %c0_i32 = arith.constant 0 : i32
    %c0_i32_0 = arith.constant 0 : i32
    return %arg0, %c0_i32 : i32, i32
  }
  func.func @transform_2(%arg0: i32) -> (i32, i32) {
    %c0_i32 = arith.constant 0 : i32
    %c0_i32_0 = arith.constant 0 : i32
    %c0_i32_1 = arith.constant 0 : i32
    return %c0_i32, %c0_i32_0 : i32, i32
  }
  func.func @transform_3(%arg0: i32) -> (i32, i32) {
    %c0_i32 = arith.constant 0 : i32
    %c0_i32_0 = arith.constant 0 : i32
    %c0_i32_1 = arith.constant 0 : i32
    return %c0_i32, %c0_i32_0 : i32, i32
  }
  func.func @transform_4(%arg0: i32) -> (i32, i32) {
    %c0_i32 = arith.constant 0 : i32
    %c0_i32_0 = arith.constant 0 : i32
    %c0_i32_1 = arith.constant 0 : i32
    return %c0_i32, %c0_i32_0 : i32, i32
  }
  func.func @transform_5(%arg0: i32) -> (i32, i32) {
    %c0_i32 = arith.constant 0 : i32
    %c0_i32_0 = arith.constant 0 : i32
    %c0_i32_1 = arith.constant 0 : i32
    return %c0_i32, %c0_i32_0 : i32, i32
  }
  func.func @transform_6(%arg0: i32) -> (i32, i32) {
    %c0_i32 = arith.constant 0 : i32
    %c0_i32_0 = arith.constant 0 : i32
    %c0_i32_1 = arith.constant 0 : i32
    return %c0_i32, %c0_i32_0 : i32, i32
  }
  func.func @transform_7(%arg0: i32) -> (i32, i32) {
    %c0_i32 = arith.constant 0 : i32
    %c0_i32_0 = arith.constant 0 : i32
    %c0_i32_1 = arith.constant 0 : i32
    return %c0_i32, %c0_i32_0 : i32, i32
  }
  func.func @transform_8(%arg0: i32) -> (i32, i32) {
    %c0_i32 = arith.constant 0 : i32
    %c0_i32_0 = arith.constant 0 : i32
    %c0_i32_1 = arith.constant 0 : i32
    return %c0_i32, %c0_i32_0 : i32, i32
  }
  func.func @transform_9(%arg0: i32) -> (i32, i32) {
    %c0_i32 = arith.constant 0 : i32
    %c0_i32_0 = arith.constant 0 : i32
    %c0_i32_1 = arith.constant 0 : i32
    return %c0_i32, %c0_i32_0 : i32, i32
  }
  func.func @transform_10(%arg0: i32) -> (i32, i32) {
    %c0_i32 = arith.constant 0 : i32
    %c0_i32_0 = arith.constant 0 : i32
    %c0_i32_1 = arith.constant 0 : i32
    return %c0_i32, %c0_i32_0 : i32, i32
  }
  func.func @transform_11(%arg0: i32) -> (i32, i32) {
    %c0_i32 = arith.constant 0 : i32
    %c0_i32_0 = arith.constant 0 : i32
    %c0_i32_1 = arith.constant 0 : i32
    return %c0_i32, %c0_i32_0 : i32, i32
  }
  func.func @transform_12(%arg0: i32) -> (i32, i32) {
    %c0_i32 = arith.constant 0 : i32
    %c0_i32_0 = arith.constant 0 : i32
    %c0_i32_1 = arith.constant 0 : i32
    return %c0_i32, %c0_i32_0 : i32, i32
  }
  func.func @transform_13(%arg0: i32) -> (i32, i32) {
    %c0_i32 = arith.constant 0 : i32
    %c0_i32_0 = arith.constant 0 : i32
    %c0_i32_1 = arith.constant 0 : i32
    return %c0_i32, %c0_i32_0 : i32, i32
  }
  func.func @transform_14(%arg0: i32) -> (i32, i32) {
    %c0_i32 = arith.constant 0 : i32
    %c0_i32_0 = arith.constant 0 : i32
    %c0_i32_1 = arith.constant 0 : i32
    return %c0_i32, %c0_i32_0 : i32, i32
  }
}

</mosaic_0001>

<bundles_post_ra>
// kernel: tpu_custom_call.1
= control target key start
LH: loop header
LB: loop body
LE: loop exit
PB: predicated region body
PF: predicated region fallthrough
CT: control target
= control target key end

     0   :  { %19 = vsyncpa [#allocation5], 0  ;;  %s1382_s29 = smov 0   ;;  %s1622_s0 = inlined_call_operand.vmem [shape: s32[1,384], index: 0, kind: input, shape index: {}]   ;;  %s1623_s1 = inlined_call_operand.vmem [shape: f32[384,8], index: 1, kind: input, shape index: {}]   ;;  %s1624_s2 = inlined_call_operand.vmem [shape: f32[1,8], index: 2, kind: input, shape index: {}]   ;;  %s1625_s3 = inlined_call_operand.vmem [shape: f32[1,8], index: 3, kind: input, shape index: {}]   ;;  %s1626_s4 = inlined_call_operand.vmem [shape: f32[8,128], index: 4, kind: input, shape index: {}]   ;;  %s1627_s5 = inlined_call_operand.vmem [shape: f32[1,128], index: 5, kind: input, shape index: {}]   ;;  %s1628_s6 = inlined_call_operand.vmem [shape: f32[1,128], index: 6, kind: input, shape index: {}]   ;;  %s1629_s7 = inlined_call_operand.vmem [shape: f32[1,128], index: 7, kind: input, shape index: {}]   ;;  %s1630_s8 = inlined_call_operand.vmem [shape: f32[128,128], index: 8, kind: input, shape index: {}]   ;;  %s1631_s9 = inlined_call_operand.vmem [shape: f32[1,128], index: 9, kind: input, shape index: {}]   ;;  %s1632_s10 = inlined_call_operand.vmem [shape: f32[1,128], index: 10, kind: input, shape index: {}]   ;;  %s1633_s11 = inlined_call_operand.vmem [shape: f32[1,128], index: 11, kind: input, shape index: {}]   ;;  %s1634_s12 = inlined_call_operand.vmem [shape: f32[128,128], index: 12, kind: input, shape index: {}]   ;;  %s1635_s13 = inlined_call_operand.vmem [shape: f32[1,128], index: 13, kind: input, shape index: {}]   ;;  %s1636_s14 = inlined_call_operand.hbm [shape: f32[8,128], index: 14, kind: output, shape index: {}]  }
   0x1 LB: > { %s1388_s30 = sadd.s32 4294967295, %s1297_s29   ;;  %p1046_p0 = scmp.ge.s32.totalorder %s1297_s29, 1  ;;  %s1297_s29 = sphi %s1382_s29, %s25_s29  }
   0x2   : > { %p417_p1 = scmp.lt.s32.totalorder %s1297_s29, 4 }
   0x4   : > { %p418_p2 = pnand %p1046_p0, %p417_p1 }
   0x5   : > { %p461_p3 = scmp.lt.s32.totalorder (!%p418_p2), %s1388_s30, 2  ;;  %s1047_s15 = sshll.u32 (!%p418_p2), %s1388_s30, 4 }
   0x6   : > { %421 = sbr.rel (%p418_p2) target bundleno = 1175 (0x497), region = 76  ;;  %p465_p4 = scmp.lt.s32.totalorder (!%p418_p2), %s1047_s15, 47 }
   0x7   : > { %p1049_p5 = scmp.ne.s32.totalorder (!%p418_p2), %s1388_s30, 0 }
   0xb   : > { %s462_s16 = scalar_select %p461_p3, %s1388_s30, 2 }
   0xc   : > { %s1638_s15 = smov (!%p465_p4, %s1047_s15), 47  ;;  %473 = sbr.rel (%p1049_p5) target bundleno = 20 (0x14), region = 80 }
   0xd   : > { %s463_s19 = scalar_lea.vmem %s1622_s0, %s462_s16  ;;  %s1048_s20 = sshll.u32 %s1638_s15, 3 }
   0xe   : > { %s1401_s23 = scalar_lea.vmem %s1623_s1, %s1048_s20 }
  0x11   : > { %vm474_vm0 = vcmask 64512   ;;  %vm476_vm1 = vcmask 7168   ;;  %v1299_v0 = vmov 0.0  }
  0x12   : > { %475 = vst.msk [vmem:[#allocation2] sm:$0xff] %vm474_vm0, %v1299_v0 }
  0x13   : > { %477 = vst.msk [vmem:[#allocation3] sm:$0xff] %vm476_vm1, %v1299_v0 }
  0x14 PF: > { %v493_v1 = vld [vmem:[%s1401_s23 + $0x78] sm:$0xff]  ;;  %v495_v2 = vlaneseq  ;;  %v1300_v3 = vmov 0.0   ;;  %v492_v4 = vld [vmem:[%s1401_s23 + $0x70] sm:$0xff]  ;;  %vm1301_vm2 = vmmov 0   ;;  %v491_v6 = vld [vmem:[%s1401_s23 + $0x68] sm:$0xff]  ;;  %v1302_v22 = vmov 1.0  }
  0x15   : > { %1122 = vmatprep.subr.mxu0 %v1300_v3  ;;  %1154 = vmatprep.mubr.msk.f32.mxu0 %vm1301_vm2, %v1300_v3  ;;  %v490_v7 = vld [vmem:[%s1401_s23 + $0x60] sm:$0xff]  ;;  %v489_v9 = vld [vmem:[%s1401_s23 + $0x58] sm:$0xff]  ;;  %v488_v11 = vld [vmem:[%s1401_s23 + $0x50] sm:$0xff]  ;;  %vm582_vm4 = vcmask 7168   ;;  %vm576_vm5 = vcmask 64512   ;;  %p1053_p6 = scmp.ne.s32.totalorder %s1388_s30, 2 }
  0x16   : > { %1123 = vmatpush3.msra.mxu0 %v493_v1  ;;  %v1406_v5 = vshrl.u32 %v495_v2, 7  ;;  %v1050_v8 = vld [vmem:[%s463_s19] ss:$0 sm:$0xff]  ;;  %v487_v12 = vld [vmem:[%s1401_s23 + $0x48] sm:$0xff]  ;;  %v485_v14 = vld [vmem:[%s1401_s23 + $0x38] sm:$0xff] }
  0x17   : > { %1124 = vmatprep.subr.mxu0 %v1300_v3  ;;  %v486_v13 = vld [vmem:[%s1401_s23 + $0x40] sm:$0xff]  ;;  %v484_v15 = vld [vmem:[%s1401_s23 + $0x30] sm:$0xff]  ;;  %v483_v16 = vld [vmem:[%s1401_s23 + $0x28] sm:$0xff] }
  0x18   : > { %1125 = vmatpush3.msra.mxu0 %v492_v4  ;;  %vm501_vm3 = vcmp.eq.s32.totalorder %v1050_v8, %v1406_v5  ;;  %v482_v17 = vld [vmem:[%s1401_s23 + $0x20] sm:$0xff]  ;;  %v481_v18 = vld [vmem:[%s1401_s23 + $0x18] sm:$0xff]  ;;  %v480_v19 = vld [vmem:[%s1401_s23 + $0x10] sm:$0xff] }
  0x19   : > { %1126 = vmatprep.subr.mxu0 %v1300_v3  ;;  %v1051_v10 = vsel %vm501_vm3, 1.0, %v1300_v3  ;;  %v479_v20 = vld [vmem:[%s1401_s23 + $0x8] sm:$0xff]  ;;  %v478_v21 = vld [vmem:[%s1401_s23] sm:$0xff] }
  0x1a   : > { %1127 = vmatpush3.msra.mxu0 %v491_v6  ;;  %579 = vadd.xlane.f32.xlu0 %v1051_v10  ;;  %v578_v23 = vld [vmem:[#allocation3] sm:$0xff]  ;;  %v504_v26 = vld [vmem:[#allocation2] sm:$0xff] }
  0x1b   : > { %1128 = vmatprep.subr.mxu0 %v1300_v3 }
  0x1c   : > { %1129 = vmatpush3.msra.mxu0 %v490_v7 }
  0x1d   : > { %1130 = vmatprep.subr.mxu0 %v1300_v3 }
  0x1e   : > { %1131 = vmatpush3.msra.mxu0 %v489_v9 }
  0x1f   : > { %1132 = vmatprep.subr.mxu0 %v1300_v3 }
  0x20   : > { %1133 = vmatpush3.msra.mxu0 %v488_v11 }
  0x21   : > { %1134 = vmatprep.subr.mxu0 %v1300_v3 }
  0x22   : > { %1135 = vmatpush3.msra.mxu0 %v487_v12 }
  0x23   : > { %1136 = vmatprep.subr.mxu0 %v1300_v3 }
  0x24   : > { %1137 = vmatpush3.msra.mxu0 %v486_v13 }
  0x25   : > { %1138 = vmatprep.subr.mxu0 %v1300_v3 }
  0x26   : > { %1139 = vmatpush3.msra.mxu0 %v485_v14 }
  0x27   : > { %1140 = vmatprep.subr.mxu0 %v1300_v3 }
  0x28   : > { %1141 = vmatpush3.msra.mxu0 %v484_v15 }
  0x29   : > { %1142 = vmatprep.subr.mxu0 %v1300_v3 }
  0x2a   : > { %1143 = vmatpush3.msra.mxu0 %v483_v16 }
  0x2b   : > { %1144 = vmatprep.subr.mxu0 %v1300_v3 }
  0x2c   : > { %1145 = vmatpush3.msra.mxu0 %v482_v17 }
  0x2d   : > { %1146 = vmatprep.subr.mxu0 %v1300_v3 }
  0x2e   : > { %1147 = vmatpush3.msra.mxu0 %v481_v18 }
  0x2f   : > { %1148 = vmatprep.subr.mxu0 %v1300_v3 }
  0x30   : > { %1149 = vmatpush3.msra.mxu0 %v480_v19 }
  0x31   : > { %1150 = vmatprep.subr.mxu0 %v1300_v3 }
  0x32   : > { %1151 = vmatpush3.msra.mxu0 %v479_v20 }
  0x33   : > { %1152 = vmatprep.subr.mxu0 %v1300_v3 }
  0x34   : > { %1153 = vmatpush3.msra.mxu0 %v478_v21 }
  0x35   : > { %1155 = vmatmul.mubr.msk.f32.vlgmr.msra.gmra.mxu0 %vm501_vm3, %v1302_v22 }
  0xa3   : > { %v580_v24 = vpop.xlane.xlu0 %579 }
  0xa4   : > { %v581_v25 = vadd.f32 %v580_v24, %v578_v23 }
  0xa6   : > { %583 = vst.msk [vmem:[#allocation3] sm:$0xff] %vm582_vm4, %v581_v25 }
  0xf4   : > { %587 = sbr.rel (%p1053_p6) target bundleno = 1160 (0x488), region = 84 }
  0xf5   : > { %v571_v27 = vpop.f32.mrf.mxu0 }
  0xf6   : > { %v575_v28 = vadd.f32 %v571_v27, %v504_v26 }
  0xf7   : > { %v1156_v29 = vpop.f32.mrf.mxu0 }
  0xf8   : > { %577 = vst.msk [vmem:[#allocation2] sm:$0xff] %vm576_vm5, %v575_v28 }
  0xf9   : > { %v588_v30 = vld [vmem:[#allocation3] sm:$0xff]  ;;  %v640_v31 = vld [vmem:[%s1626_s4] sm:$0xff]  ;;  %v1303_v32 = vmov 0   ;;  %v1304_v34 = vmov 0.0   ;;  %vm1305_vm6 = vmmov 0   ;;  %vm598_vm7 = vcmp.lt.s32.totalorder %v1406_v5, 4 }
  0xfa   : > { %1254 = vset.pattern.permute.xlu0 %v1303_v32  ;;  %v589_v33 = vmax.f32 %v588_v30, 1.0  ;;  %1157 = vmatprep.subr.mxu0 %v1304_v34  ;;  %v1441_v38 = vsel %vm598_vm7, 1.0, %v1304_v34  ;;  %v1055_v62 = vld [vmem:[%s1624_s2] ss:$0 sm:$0xff]  ;;  %v776_v3 = vld [vmem:[%s1630_s8 + $0x78] sm:$0xff]  ;;  %v775_v4 = vld [vmem:[%s1630_s8 + $0x70] sm:$0xff] }
  0xfb   : > { %1158 = vmatpush3.msra.mxu0 %v640_v31  ;;  %1159 = vmatprep.mubr.msk.f32.mxu0 %vm1305_vm6, %v1304_v34  ;;  %v1056_v0 = vld [vmem:[%s1625_s3] ss:$0 sm:$0xff]  ;;  %v774_v5 = vld [vmem:[%s1630_s8 + $0x68] sm:$0xff]  ;;  %v772_v7 = vld [vmem:[%s1630_s8 + $0x58] sm:$0xff] }
  0xfc   : > { %593 = vperm.xlu0 %1254, %v589_v33   ;;  %1162 = vmatprep.subr.mxu1 %v1304_v34  ;;  %v773_v6 = vld [vmem:[%s1630_s8 + $0x60] sm:$0xff]  ;;  %v771_v8 = vld [vmem:[%s1630_s8 + $0x50] sm:$0xff]  ;;  %v770_v9 = vld [vmem:[%s1630_s8 + $0x48] sm:$0xff] }
  0xfd   : > { %1194 = vmatprep.mubr.msk.f32.mxu1 %vm1305_vm6, %v1304_v34  ;;  %1197 = vmatprep.subr.mxu0 %v1304_v34  ;;  %v769_v10 = vld [vmem:[%s1630_s8 + $0x40] sm:$0xff]  ;;  %v768_v11 = vld [vmem:[%s1630_s8 + $0x38] sm:$0xff]  ;;  %v767_v12 = vld [vmem:[%s1630_s8 + $0x30] sm:$0xff] }
  0xfe   : > { %1163 = vmatpush3.msra.mxu1 %v776_v3  ;;  %v766_v13 = vld [vmem:[%s1630_s8 + $0x28] sm:$0xff]  ;;  %v765_v14 = vld [vmem:[%s1630_s8 + $0x20] sm:$0xff]  ;;  %v764_v15 = vld [vmem:[%s1630_s8 + $0x18] sm:$0xff] }
  0xff   : > { %v590_v36 = vld [vmem:[#allocation2] sm:$0xff]  ;;  %1164 = vmatprep.subr.mxu1 %v1304_v34  ;;  %v763_v16 = vld [vmem:[%s1630_s8 + $0x10] sm:$0xff]  ;;  %v762_v17 = vld [vmem:[%s1630_s8 + $0x8] sm:$0xff] }
 0x100   : > { %1165 = vmatpush3.msra.mxu1 %v775_v4  ;;  %v761_v18 = vld [vmem:[%s1630_s8] sm:$0xff] }
 0x101   : > { %1166 = vmatprep.subr.mxu1 %v1304_v34  ;;  %v1057_v19 = vld [vmem:[%s1627_s5] ss:$0 sm:$0xff] }
 0x102   : > { %1167 = vmatpush3.msra.mxu1 %v774_v5  ;;  %v894_v3 = vld [vmem:[%s1634_s12] sm:$0xff] }
 0x103   : > { %1168 = vmatprep.subr.mxu1 %v1304_v34  ;;  %v1061_v4 = vld [vmem:[%s1631_s9] ss:$0 sm:$0xff] }
 0x104   : > { %1169 = vmatpush3.msra.mxu1 %v773_v6 }
 0x105   : > { %1170 = vmatprep.subr.mxu1 %v1304_v34 }
 0x106   : > { %1171 = vmatpush3.msra.mxu1 %v772_v7 }
 0x107   : > { %1172 = vmatprep.subr.mxu1 %v1304_v34 }
 0x108   : > { %1173 = vmatpush3.msra.mxu1 %v771_v8 }
 0x109   : > { %1174 = vmatprep.subr.mxu1 %v1304_v34 }
 0x10a   : > { %1175 = vmatpush3.msra.mxu1 %v770_v9 }
 0x10b   : > { %1176 = vmatprep.subr.mxu1 %v1304_v34 }
 0x10c   : > { %1177 = vmatpush3.msra.mxu1 %v769_v10 }
 0x10d   : > { %1178 = vmatprep.subr.mxu1 %v1304_v34 }
 0x10e   : > { %1179 = vmatpush3.msra.mxu1 %v768_v11 }
 0x10f   : > { %1180 = vmatprep.subr.mxu1 %v1304_v34 }
 0x110   : > { %1181 = vmatpush3.msra.mxu1 %v767_v12 }
 0x111   : > { %1182 = vmatprep.subr.mxu1 %v1304_v34 }
 0x112   : > { %1183 = vmatpush3.msra.mxu1 %v766_v13 }
 0x113   : > { %1184 = vmatprep.subr.mxu1 %v1304_v34 }
 0x114   : > { %1185 = vmatpush3.msra.mxu1 %v765_v14 }
 0x115   : > { %1186 = vmatprep.subr.mxu1 %v1304_v34 }
 0x116   : > { %1187 = vmatpush3.msra.mxu1 %v764_v15 }
 0x117   : > { %1188 = vmatprep.subr.mxu1 %v1304_v34 }
 0x118   : > { %1189 = vmatpush3.msra.mxu1 %v763_v16 }
 0x119   : > { %1190 = vmatprep.subr.mxu1 %v1304_v34 }
 0x11a   : > { %1191 = vmatpush3.msra.mxu1 %v762_v17 }
 0x11b   : > { %1192 = vmatprep.subr.mxu1 %v1304_v34 }
 0x11c   : > { %1193 = vmatpush3.msra.mxu1 %v761_v18 }
 0x177   : > { %v594_v35 = vpop.permute.xlu0 %593 }
 0x178   : > { %1255 = vrcp.f32 %v594_v35 }
 0x185   : > { %v1256_v37 = vpop.eup %1255 }
 0x186   : > { %v597_v39 = vmul.f32 %v1256_v37, %v590_v36 }
 0x188   : > { %v603_v40 = vmul.f32 %v1441_v38, %v597_v39 }
 0x18a   : > { %v604_v41 = vsel %vm576_vm5, %v603_v40, 0.0 }
 0x18b   : > { %v605_v42 = vrot.slane %v604_v41, 4 }
 0x18d   : > { %v606_v43 = vadd.f32 %v605_v42, %v604_v41 }
 0x18f   : > { %v607_v44 = vrot.slane %v606_v43, 2 }
 0x191   : > { %v608_v45 = vadd.f32 %v607_v44, %v606_v43 }
 0x193   : > { %v609_v46 = vrot.slane %v608_v45, 1 }
 0x195   : > { %v610_v47 = vadd.f32 %v609_v46, %v608_v45 }
 0x197   : > { %v611_v48 = vmul.f32 0.25, %v610_v47  ;;  %v1059_v47 = vld [vmem:[%s1628_s6] ss:$0 sm:$0xff] }
 0x199   : > { %v612_v49 = vsub.f32 %v597_v39, %v611_v48 }
 0x19b   : > { %v613_v50 = vmul.f32 %v1441_v38, %v612_v49 }
 0x19d   : > { %v614_v51 = vmul.f32 %v613_v50, %v613_v50 }
 0x19f   : > { %v615_v52 = vsel %vm576_vm5, %v614_v51, 0.0 }
 0x1a0   : > { %v616_v53 = vrot.slane %v615_v52, 4 }
 0x1a2   : > { %v617_v54 = vadd.f32 %v616_v53, %v615_v52  ;;  %v909_v52 = vld [vmem:[%s1634_s12 + $0x78] sm:$0xff]  ;;  %v908_v53 = vld [vmem:[%s1634_s12 + $0x70] sm:$0xff] }
 0x1a4   : > { %v618_v55 = vrot.slane %v617_v54, 2 }
 0x1a6   : > { %v619_v56 = vadd.f32 %v618_v55, %v617_v54  ;;  %v907_v54 = vld [vmem:[%s1634_s12 + $0x68] sm:$0xff]  ;;  %v906_v55 = vld [vmem:[%s1634_s12 + $0x60] sm:$0xff] }
 0x1a8   : > { %v620_v57 = vrot.slane %v619_v56, 1 }
 0x1aa   : > { %v621_v58 = vadd.f32 %v620_v57, %v619_v56  ;;  %v905_v56 = vld [vmem:[%s1634_s12 + $0x58] sm:$0xff]  ;;  %v904_v57 = vld [vmem:[%s1634_s12 + $0x50] sm:$0xff] }
 0x1ac   : > { %v622_v59 = vmul.f32 0.25, %v621_v58  ;;  %v903_v58 = vld [vmem:[%s1634_s12 + $0x48] sm:$0xff] }
 0x1ae   : > { %v623_v60 = vadd.f32 1e-05, %v622_v59  ;;  %v902_v59 = vld [vmem:[%s1634_s12 + $0x40] sm:$0xff] }
 0x1b0   : > { %1257 = vrsqrt.f32 %v623_v60  ;;  %v901_v60 = vld [vmem:[%s1634_s12 + $0x38] sm:$0xff] }
 0x1bd   : > { %v1258_v61 = vpop.eup %1257 }
 0x1be   : > { %v625_v63 = vmul.f32 %v1258_v61, %v612_v49  ;;  %v1060_v49 = vld [vmem:[%s1629_s7] ss:$0 sm:$0xff]  ;;  %v900_v61 = vld [vmem:[%s1634_s12 + $0x30] sm:$0xff] }
 0x1c0   : > { %v632_v1 = vmul.f32 %v1055_v62, %v625_v63  ;;  %v899_v62 = vld [vmem:[%s1634_s12 + $0x28] sm:$0xff]  ;;  %v898_v63 = vld [vmem:[%s1634_s12 + $0x20] sm:$0xff] }
 0x1c2   : > { %v639_v2 = vadd.f32 %v1056_v0, %v632_v1  ;;  %v897_v0 = vld [vmem:[%s1634_s12 + $0x18] sm:$0xff]  ;;  %v896_v1 = vld [vmem:[%s1634_s12 + $0x10] sm:$0xff] }
 0x1c4   : > { %1160 = vmatmul.mubr.msk.f32.vlgmr.msra.gmra.mxu0 %vm576_vm5, %v639_v2  ;;  %v895_v2 = vld [vmem:[%s1634_s12 + $0x8] sm:$0xff] }
 0x1c5   : > { %1229 = vmatprep.mubr.msk.f32.mxu0 %vm1305_vm6, %v1304_v34  ;;  %1198 = vmatpush3.msra.mxu0 %v909_v52 }
 0x1c6   : > { %1199 = vmatprep.subr.mxu0 %v1304_v34 }
 0x1c7   : > { %1200 = vmatpush3.msra.mxu0 %v908_v53 }
 0x1c8   : > { %1201 = vmatprep.subr.mxu0 %v1304_v34 }
 0x1c9   : > { %1202 = vmatpush3.msra.mxu0 %v907_v54 }
 0x1ca   : > { %1203 = vmatprep.subr.mxu0 %v1304_v34 }
 0x1cb   : > { %1204 = vmatpush3.msra.mxu0 %v906_v55 }
 0x1cc   : > { %1205 = vmatprep.subr.mxu0 %v1304_v34 }
 0x1cd   : > { %1206 = vmatpush3.msra.mxu0 %v905_v56 }
 0x1ce   : > { %1207 = vmatprep.subr.mxu0 %v1304_v34 }
 0x1cf   : > { %1208 = vmatpush3.msra.mxu0 %v904_v57 }
 0x1d0   : > { %1209 = vmatprep.subr.mxu0 %v1304_v34 }
 0x1d1   : > { %1210 = vmatpush3.msra.mxu0 %v903_v58 }
 0x1d2   : > { %1211 = vmatprep.subr.mxu0 %v1304_v34 }
 0x1d3   : > { %1212 = vmatpush3.msra.mxu0 %v902_v59 }
 0x1d4   : > { %1213 = vmatprep.subr.mxu0 %v1304_v34 }
 0x1d5   : > { %1214 = vmatpush3.msra.mxu0 %v901_v60 }
 0x1d6   : > { %1215 = vmatprep.subr.mxu0 %v1304_v34 }
 0x1d7   : > { %1216 = vmatpush3.msra.mxu0 %v900_v61 }
 0x1d8   : > { %1217 = vmatprep.subr.mxu0 %v1304_v34 }
 0x1d9   : > { %1218 = vmatpush3.msra.mxu0 %v899_v62 }
 0x1da   : > { %1219 = vmatprep.subr.mxu0 %v1304_v34 }
 0x1db   : > { %1220 = vmatpush3.msra.mxu0 %v898_v63 }
 0x1dc   : > { %1221 = vmatprep.subr.mxu0 %v1304_v34 }
 0x1dd   : > { %1222 = vmatpush3.msra.mxu0 %v897_v0 }
 0x1de   : > { %1223 = vmatprep.subr.mxu0 %v1304_v34 }
 0x1df   : > { %1224 = vmatpush3.msra.mxu0 %v896_v1 }
 0x1e0   : > { %1225 = vmatprep.subr.mxu0 %v1304_v34 }
 0x1e1   : > { %1226 = vmatpush3.msra.mxu0 %v895_v2 }
 0x1e2   : > { %1227 = vmatprep.subr.mxu0 %v1304_v34 }
 0x1e3   : > { %1228 = vmatpush3.msra.mxu0 %v894_v3 }
 0x284   : > { %v717_v20 = vpop.f32.mrf.mxu0 }
 0x285   : > { %v718_v21 = vadd.f32 %v1057_v19, %v717_v20 }
 0x286   : > { %v1161_v22 = vpop.f32.mrf.mxu0 }
 0x287   : > { %vm721_vm8 = vcmp.ge.f32.partialorder %v718_v21, 0.0  ;;  %v722_v23 = vmul.f32 0.1, %v718_v21 }
 0x289   : > { %v723_v24 = vsel %vm721_vm8, %v718_v21, %v722_v23 }
 0x28a   : > { %v726_v25 = vmul.f32 %v1441_v38, %v723_v24 }
 0x28c   : > { %v727_v26 = vrot.slane %v726_v25, 4 }
 0x28e   : > { %v728_v27 = vadd.f32 %v727_v26, %v726_v25 }
 0x290   : > { %v729_v28 = vrot.slane %v728_v27, 2 }
 0x292   : > { %v730_v29 = vadd.f32 %v729_v28, %v728_v27 }
 0x294   : > { %v731_v30 = vrot.slane %v730_v29, 1 }
 0x296   : > { %v732_v31 = vadd.f32 %v731_v30, %v730_v29  ;;  %v1062_v29 = vld [vmem:[%s1632_s10] ss:$0 sm:$0xff] }
 0x298   : > { %v733_v32 = vmul.f32 0.25, %v732_v31 }
 0x29a   : > { %v734_v33 = vsub.f32 %v723_v24, %v733_v32 }
 0x29c   : > { %v735_v35 = vmul.f32 %v1441_v38, %v734_v33 }
 0x29e   : > { %v736_v36 = vmul.f32 %v735_v35, %v735_v35 }
 0x2a0   : > { %v737_v37 = vrot.slane %v736_v36, 4 }
 0x2a2   : > { %v738_v39 = vadd.f32 %v737_v37, %v736_v36 }
 0x2a4   : > { %v739_v40 = vrot.slane %v738_v39, 2 }
 0x2a6   : > { %v740_v41 = vadd.f32 %v739_v40, %v738_v39 }
 0x2a8   : > { %v741_v42 = vrot.slane %v740_v41, 1 }
 0x2aa   : > { %v742_v43 = vadd.f32 %v741_v42, %v740_v41 }
 0x2ac   : > { %v743_v44 = vmul.f32 0.25, %v742_v43 }
 0x2ae   : > { %v744_v45 = vadd.f32 1e-05, %v743_v44 }
 0x2b0   : > { %1259 = vrsqrt.f32 %v744_v45 }
 0x2bd   : > { %v1260_v46 = vpop.eup %1259 }
 0x2be   : > { %v746_v48 = vmul.f32 %v1260_v46, %v734_v33  ;;  %v1064_v33 = vld [vmem:[%s1635_s13] ss:$0 sm:$0xff] }
 0x2c0   : > { %v753_v50 = vmul.f32 %v1059_v47, %v746_v48 }
 0x2c2   : > { %v760_v51 = vadd.f32 %v1060_v49, %v753_v50 }
 0x2c4   : > { %1195 = vmatmul.mubr.f32.vlgmr.msra.gmra.mxu1 %v760_v51 }
 0x384   : > { %v850_v5 = vpop.f32.mrf.mxu1 }
 0x385   : > { %v851_v6 = vadd.f32 %v1061_v4, %v850_v5 }
 0x386   : > { %v1196_v7 = vpop.f32.mrf.mxu1 }
 0x387   : > { %vm854_vm9 = vcmp.ge.f32.partialorder %v851_v6, 0.0  ;;  %v855_v8 = vmul.f32 0.1, %v851_v6 }
 0x389   : > { %v856_v9 = vsel %vm854_vm9, %v851_v6, %v855_v8 }
 0x38a   : > { %v859_v10 = vmul.f32 %v1441_v38, %v856_v9 }
 0x38c   : > { %v860_v11 = vrot.slane %v859_v10, 4 }
 0x38e   : > { %v861_v12 = vadd.f32 %v860_v11, %v859_v10 }
 0x390   : > { %v862_v13 = vrot.slane %v861_v12, 2 }
 0x392   : > { %v863_v14 = vadd.f32 %v862_v13, %v861_v12 }
 0x394   : > { %v864_v15 = vrot.slane %v863_v14, 1 }
 0x396   : > { %v865_v16 = vadd.f32 %v864_v15, %v863_v14 }
 0x398   : > { %v866_v34 = vmul.f32 0.25, %v865_v16 }
 0x39a   : > { %v867_v17 = vsub.f32 %v856_v9, %v866_v34 }
 0x39c   : > { %v868_v18 = vmul.f32 %v1441_v38, %v867_v17  ;;  %v1063_v38 = vld [vmem:[%s1633_s11] ss:$0 sm:$0xff] }
 0x39e   : > { %v869_v19 = vmul.f32 %v868_v18, %v868_v18 }
 0x3a0   : > { %v870_v20 = vrot.slane %v869_v19, 4 }
 0x3a2   : > { %v871_v21 = vadd.f32 %v870_v20, %v869_v19 }
 0x3a4   : > { %v872_v22 = vrot.slane %v871_v21, 2 }
 0x3a6   : > { %v873_v23 = vadd.f32 %v872_v22, %v871_v21 }
 0x3a8   : > { %v874_v24 = vrot.slane %v873_v23, 1 }
 0x3aa   : > { %v875_v25 = vadd.f32 %v874_v24, %v873_v23 }
 0x3ac   : > { %v876_v26 = vmul.f32 0.25, %v875_v25 }
 0x3ae   : > { %v877_v27 = vadd.f32 1e-05, %v876_v26 }
 0x3b0   : > { %1261 = vrsqrt.f32 %v877_v27 }
 0x3bd   : > { %v1262_v28 = vpop.eup %1261 }
 0x3be   : > { %v879_v30 = vmul.f32 %v1262_v28, %v867_v17 }
 0x3c0   : > { %v886_v31 = vmul.f32 %v1062_v29, %v879_v30 }
 0x3c2   : > { %v893_v32 = vadd.f32 %v1063_v38, %v886_v31 }
 0x3c4   : > { %1230 = vmatmul.mubr.f32.vlgmr.msra.gmra.mxu0 %v893_v32 }
 0x484   : > { %v983_v35 = vpop.f32.mrf.mxu0 }
 0x485   : > { %v984_v36 = vadd.f32 %v1064_v33, %v983_v35 }
 0x486   : > { %v1231_v37 = vpop.f32.mrf.mxu0 }
 0x487   : > { %987 = vst [vmem:[#allocation4] sm:$0xff] %v984_v36 }
 0x488 PF: > { %p1236_p7 = scmp.eq.s32.totalorder %s1388_s30, 2  ;;  %s1306_s24 = smov [#allocation4]  }
 0x489   : > { %s995_s25 = sshll.u32 %s1306_s24, 4  ;;  %s996_s25 = int_to_ptr.vmem [resolvable:$true] %s995_s25 }
 0x48a   : > { %s1263_s26 = scalar_lea.vmem %s996_s25, 128  ;;  %p1270_p11 = scmp.lt.s32.totalorder %s996_s25, %s996_s25 }
 0x48b   : > { %p1264_p8 = scmp.ne.s32.totalorder %s996_s25, %s1263_s26  ;;  %p1271_p12 = scmp.lt.s32.totalorder %s1263_s26, %s1263_s26 }
 0x48d   : > { %p1265_p9 = pnand %p1264_p8, %p1236_p7  ;;  %p1272_p13 = por %p1271_p12, %p1270_p11 }
 0x48f   : > { %p1266_p10 = pneg %p1265_p9 }
 0x491   : > { %p1273_p0 = pnand %p1272_p13, %p1266_p10 }
 0x493   : > { %1276 = shalt.err (!%p1273_p0)
}
 0x494   : > { %1233 = dma.vmem_to_hbm [thread:$0]  (%p1236_p7), %s996_s25, 128, %s1636_s14, [#allocation5]  }
 0x495   : > { %1292 = dma.done.wait (%p1236_p7), [#allocation5], 128  }
 0x496   : > { %1294 = vsyncadd (%p1236_p7), [#allocation5], 4294967168 }
 0x497 PF: > { %s25_s29 = sadd.s32 1, %s1297_s29  }
 0x498   : > { %p22_p1 = scmp.ge.s32.totalorder %s25_s29, 5  }
 0x49a   :  { %24 = sbr.rel (!%p22_p1) target bundleno = 1 (0x1), region = 114 }
 0x49f   :  { %1008 = vsyncpa [#allocation5], 1 }
 0x4a0   :  { %1010 = vsyncpa [#allocation5 + $0x1], 1 }

</bundles_post_ra>
